<compile_context>
chip_gen: v5e
topology: v5e:2x2
jax: 0.10.0
libtpu: 0.0.40
codegen_flags: <defaults>
</compile_context>

<pallas_src>
import math

import jax
import jax.numpy as jnp
from jax.experimental import pallas as pl
from jax.experimental.pallas import tpu as pltpu


def _round_up(x, m):
    return ((x + m - 1) // m) * m


def _choose_tiles(n_pad):
    """Row tile (sublane axis) and contraction tile (lane axis) dividing n_pad."""
    tm = 256 if n_pad % 256 == 0 else 128
    if n_pad % 512 == 0:
        tk = 512
    elif n_pad % 256 == 0:
        tk = 256
    else:
        tk = 128
    return tm, tk


def _make_gcn_kernel(tk, has_bias):
    def kernel(*refs):
        if has_bias:
            x_ref, adj_ref, w_ref, b_ref, o_ref, sup_ref, acc_ref = refs
        else:
            x_ref, adj_ref, w_ref, o_ref, sup_ref, acc_ref = refs
            b_ref = None

        i = pl.program_id(1)
        k = pl.program_id(2)

        # support = x @ w, computed once per batch; the (N_pad, Fout_pad)
        # scratch then stays resident across all row/K tiles of this batch.
        @pl.when(jnp.logical_and(i == 0, k == 0))
        def _():
            sup = jnp.dot(x_ref[...], w_ref[...],
                          preferred_element_type=jnp.float32)
            sup_ref[...] = sup.astype(sup_ref.dtype)

        # Zero the row-tile accumulator at the start of each contraction.
        @pl.when(k == 0)
        def _():
            acc_ref[...] = jnp.zeros_like(acc_ref)

        # One (TM, TK) x (TK, Fout_pad) MXU tile of the adj @ support matmul.
        k_off = pl.multiple_of(k * tk, tk)
        s_tile = sup_ref[pl.ds(k_off, tk), :]
        acc_ref[...] += jnp.dot(adj_ref[...], s_tile,
                                preferred_element_type=jnp.float32)

        # Bias add (in f32) + single cast + store at the last contraction tile.
        @pl.when(k == pl.num_programs(2) - 1)
        def _():
            out = acc_ref[...]
            if has_bias:
                out = out + b_ref[...]
            o_ref[...] = out.astype(o_ref.dtype)

    return kernel


def graph_convolution(x, adj, weight, bias=None, *, matmul_dtype=None):
    """x: (B, N, Fin), adj: (B, N, N), weight: (Fin, Fout), bias: (Fout,) or None.

    matmul_dtype: optional dtype (e.g. jnp.bfloat16) for the adj @ support
    MXU operands; accumulation and bias add stay in f32.
    """
    B, N, Fin = x.shape
    Fout = weight.shape[1]
    out_dtype = x.dtype

    n_pad = _round_up(N, 128)
    fout_pad = _round_up(Fout, 128)
    tm, tk = _choose_tiles(n_pad)

    # Zero-pad to lane/sublane-friendly shapes (padding is mathematically inert).
    x_p = jnp.pad(x, ((0, 0), (0, n_pad - N), (0, 0)))
    adj_p = jnp.pad(adj, ((0, 0), (0, n_pad - N), (0, n_pad - N)))
    w_p = jnp.pad(weight, ((0, 0), (0, fout_pad - Fout)))

    support_dtype = jnp.float32
    if matmul_dtype is not None:
        adj_p = adj_p.astype(matmul_dtype)   # halves adj HBM traffic for bf16
        support_dtype = matmul_dtype

    has_bias = bias is not None
    inputs = [x_p, adj_p, w_p]
    in_specs = [
        # x: fetched once per batch (index constant over i, k), kernel sees 2-D.
        pl.BlockSpec((pl.Squeezed(), n_pad, Fin), lambda b, i, k: (b, 0, 0)),
        # adj: (TM, TK) tile per grid step.
        pl.BlockSpec((pl.Squeezed(), tm, tk), lambda b, i, k: (b, i, k)),
        # weight: resident.
        pl.BlockSpec((Fin, fout_pad), lambda b, i, k: (0, 0)),
    ]
    if has_bias:
        b_p = jnp.pad(bias.astype(jnp.float32).reshape(1, Fout),
                      ((0, 0), (0, fout_pad - Fout)))
        inputs.append(b_p)
        in_specs.append(pl.BlockSpec((1, fout_pad), lambda b, i, k: (0, 0)))

    kernel = _make_gcn_kernel(tk=tk, has_bias=has_bias)

    out = pl.pallas_call(
        kernel,
        out_shape=jax.ShapeDtypeStruct((B, n_pad, fout_pad), out_dtype),
        grid_spec=pltpu.PrefetchScalarGridSpec(
            num_scalar_prefetch=0,
            grid=(B, n_pad // tm, n_pad // tk),
            in_specs=in_specs,
            out_specs=pl.BlockSpec((pl.Squeezed(), tm, fout_pad),
                                   lambda b, i, k: (b, i, 0)),
            scratch_shapes=[
                pltpu.VMEM((n_pad, fout_pad), support_dtype),  # per-batch support
                pltpu.VMEM((tm, fout_pad), jnp.float32),       # row-tile accumulator
            ],
        ),
        compiler_params=pltpu.CompilerParams(
            # Row-tile axis must be "arbitrary" (shares the per-batch support
            # scratch); contraction axis must be "arbitrary" (accumulator).
            dimension_semantics=("parallel", "arbitrary", "arbitrary"),
            vmem_limit_bytes=48 * 1024 * 1024,  # safe on v5e/v6e/v7x
        ),
    )(*inputs)

    return out[:, :N, :Fout]


if __name__ == "__main__":
    # Small shapes consistent with the module's forward.
    B, N = 2, 16
    in_features, out_features = 8, 32

    key = jax.random.PRNGKey(0)
    k_x, k_adj, k_w, k_b = jax.random.split(key, 4)

    # Deterministic parameter init mirroring reset_parameters():
    # uniform(-spread, spread) with spread = sqrt(2) * sqrt(2 / (fan_in + fan_out))
    fan = in_features + out_features
    spread = math.sqrt(2.0) * math.sqrt(2.0 / fan)
    weight = jax.random.uniform(
        k_w, (in_features, out_features), jnp.float32, minval=-spread, maxval=spread
    )
    bias = jax.random.uniform(
        k_b, (out_features,), jnp.float32, minval=-spread, maxval=spread
    )

    x = jax.random.normal(k_x, (B, N, in_features), dtype=jnp.float32)
    # Simple dense "adjacency" (row-normalized, self-loops included).
    adj_raw = jax.random.uniform(k_adj, (B, N, N), jnp.float32) + jnp.eye(N)[None]
    adj = adj_raw / jnp.sum(adj_raw, axis=-1, keepdims=True)

    # f32 MXU path in the demo so the tight reference check holds; pass
    # matmul_dtype=jnp.bfloat16 on v6e/v7x for ~2-4x MXU throughput.
    out = graph_convolution(x, adj, weight, bias)
    out = jax.block_until_ready(out)

    # Reference check in plain JAX.
    support_ref = jnp.einsum("bni,io->bno", x, weight)
    ref = jnp.einsum("bnm,bmo->bno", adj, support_ref) + bias
    assert out.shape == (B, N, out_features)
    assert jnp.allclose(out, ref, atol=1e-5, rtol=1e-5)

    # Also exercise the bias=None path (no bias DMA).
    out_nb = jax.block_until_ready(graph_convolution(x, adj, weight, None))
    ref_nb = jnp.einsum("bnm,bmo->bno", adj, support_ref)
    assert jnp.allclose(out_nb, ref_nb, atol=1e-5, rtol=1e-5)

    print("KERNEL_OK")
</pallas_src>

<mosaic_0001>
module attributes {stable_mosaic.version = 11 : i64} {
  func.func @kernel(%arg0: i32, %arg1: i32, %arg2: i32, %arg3: memref<1x128x8xf32, #tpu.memory_space<vmem>>, %arg4: memref<1x128x128xf32, #tpu.memory_space<vmem>>, %arg5: memref<8x128xf32, #tpu.memory_space<vmem>>, %arg6: memref<1x128xf32, #tpu.memory_space<vmem>>, %arg7: memref<1x128x128xf32, #tpu.memory_space<vmem>>, %arg8: memref<128x128xf32, #tpu.memory_space<vmem>>, %arg9: memref<128x128xf32, #tpu.memory_space<vmem>>) attributes {dimension_semantics = [#tpu.dimension_semantics<parallel>, #tpu.dimension_semantics<arbitrary>, #tpu.dimension_semantics<arbitrary>], iteration_bounds = array<i64: 2, 1, 1>, scalar_prefetch = 0 : i64, scratch_operands = 2 : i64, tpu.core_type = #tpu.core_type<tc>, window_params = [{transform_indices = @transform_0, window_bounds = array<i64: 1, 128, 8>}, {transform_indices = @transform_1, window_bounds = array<i64: 1, 128, 128>}, {pipeline_mode = #tpu.pipeline_mode<synchronous>, transform_indices = @transform_2, window_bounds = array<i64: 8, 128>}, {pipeline_mode = #tpu.pipeline_mode<synchronous>, transform_indices = @transform_3, window_bounds = array<i64: 1, 128>}, {transform_indices = @transform_4, window_bounds = array<i64: 1, 128, 128>}]} {
    %c0_i32 = arith.constant 0 : i32
    %0 = arith.cmpi eq, %arg1, %c0_i32 : i32
    %c0_i32_0 = arith.constant 0 : i32
    %1 = arith.cmpi eq, %arg2, %c0_i32_0 : i32
    %2 = arith.andi %0, %1 : i1
    %3 = arith.extui %2 : i1 to i32
    %c0_i32_1 = arith.constant 0 : i32
    %4 = arith.cmpi ne, %3, %c0_i32_1 : i32
    scf.if %4 {
      %c0_13 = arith.constant 0 : index
      %c0_14 = arith.constant 0 : index
      %c0_15 = arith.constant 0 : index
      %21 = vector.load %arg3[%c0_13, %c0_14, %c0_15] : memref<1x128x8xf32, #tpu.memory_space<vmem>>, vector<1x128x8xf32>
      %22 = vector.shape_cast %21 : vector<1x128x8xf32> to vector<128x8xf32>
      %c0_16 = arith.constant 0 : index
      %c0_17 = arith.constant 0 : index
      %23 = vector.load %arg5[%c0_16, %c0_17] : memref<8x128xf32, #tpu.memory_space<vmem>>, vector<8x128xf32>
      %cst_18 = arith.constant dense<0.000000e+00> : vector<128x128xf32>
      %24 = tpu.matmul %22, %23, %cst_18 {dimension_numbers = #tpu.dot_dimension_numbers<[1], [0], [0], [1], [0, 0, 1, 1], [], []>} : vector<128x8xf32>, vector<8x128xf32>, vector<128x128xf32> -> vector<128x128xf32>
      %c0_19 = arith.constant 0 : index
      %c0_20 = arith.constant 0 : index
      %25 = vector.load %arg8[%c0_19, %c0_20] : memref<128x128xf32, #tpu.memory_space<vmem>>, vector<128x128xf32>
      tpu.vector_store %arg8[%c0_19, %c0_20], %24 {strides = array<i32>} : memref<128x128xf32, #tpu.memory_space<vmem>>, vector<128x128xf32>,
    } else {
    }
    %c0_i32_2 = arith.constant 0 : i32
    %5 = arith.cmpi eq, %arg2, %c0_i32_2 : i32
    %6 = arith.extui %5 : i1 to i32
    %c0_i32_3 = arith.constant 0 : i32
    %7 = arith.cmpi ne, %6, %c0_i32_3 : i32
    scf.if %7 {
      %cst_13 = arith.constant 0.000000e+00 : f32
      %21 = vector.broadcast %cst_13 : f32 to vector<128x128xf32>
      %c0_14 = arith.constant 0 : index
      %c0_15 = arith.constant 0 : index
      %22 = vector.load %arg9[%c0_14, %c0_15] : memref<128x128xf32, #tpu.memory_space<vmem>>, vector<128x128xf32>
      tpu.vector_store %arg9[%c0_14, %c0_15], %21 {strides = array<i32>} : memref<128x128xf32, #tpu.memory_space<vmem>>, vector<128x128xf32>,
    } else {
    }
    %c128_i32 = arith.constant 128 : i32
    %8 = arith.muli %arg2, %c128_i32 : i32
    %9 = tpu.assume_multiple %8, 128 : i32
    %10 = arith.index_cast %9 : i32 to index
    %c0 = arith.constant 0 : index
    %11 = vector.load %arg8[%10, %c0] : memref<128x128xf32, #tpu.memory_space<vmem>>, vector<128x128xf32>
    %c0_4 = arith.constant 0 : index
    %c0_5 = arith.constant 0 : index
    %12 = vector.load %arg9[%c0_4, %c0_5] : memref<128x128xf32, #tpu.memory_space<vmem>>, vector<128x128xf32>
    %c0_6 = arith.constant 0 : index
    %c0_7 = arith.constant 0 : index
    %c0_8 = arith.constant 0 : index
    %13 = vector.load %arg4[%c0_6, %c0_7, %c0_8] : memref<1x128x128xf32, #tpu.memory_space<vmem>>, vector<1x128x128xf32>
    %14 = vector.shape_cast %13 : vector<1x128x128xf32> to vector<128x128xf32>
    %cst = arith.constant dense<0.000000e+00> : vector<128x128xf32>
    %15 = tpu.matmul %14, %11, %cst {dimension_numbers = #tpu.dot_dimension_numbers<[1], [0], [0], [1], [0, 0, 1, 1], [], []>} : vector<128x128xf32>, vector<128x128xf32>, vector<128x128xf32> -> vector<128x128xf32>
    %16 = arith.addf %12, %15 : vector<128x128xf32>
    %c0_9 = arith.constant 0 : index
    %c0_10 = arith.constant 0 : index
    %17 = vector.load %arg9[%c0_9, %c0_10] : memref<128x128xf32, #tpu.memory_space<vmem>>, vector<128x128xf32>
    tpu.vector_store %arg9[%c0_9, %c0_10], %16 {strides = array<i32>} : memref<128x128xf32, #tpu.memory_space<vmem>>, vector<128x128xf32>,
    %c0_i32_11 = arith.constant 0 : i32
    %18 = arith.cmpi eq, %arg2, %c0_i32_11 : i32
    %19 = arith.extui %18 : i1 to i32
    %c0_i32_12 = arith.constant 0 : i32
    %20 = arith.cmpi ne, %19, %c0_i32_12 : i32
    scf.if %20 {
      %c0_13 = arith.constant 0 : index
      %c0_14 = arith.constant 0 : index
      %21 = vector.load %arg9[%c0_13, %c0_14] : memref<128x128xf32, #tpu.memory_space<vmem>>, vector<128x128xf32>
      %c0_15 = arith.constant 0 : index
      %c0_16 = arith.constant 0 : index
      %22 = vector.load %arg6[%c0_15, %c0_16] : memref<1x128xf32, #tpu.memory_space<vmem>>, vector<1x128xf32>
      %23 = vector.broadcast %22 : vector<1x128xf32> to vector<128x128xf32>
      %24 = arith.addf %21, %23 : vector<128x128xf32>
      %c0_17 = arith.constant 0 : index
      %c0_18 = arith.constant 0 : index
      %c0_19 = arith.constant 0 : index
      %25 = vector.load %arg7[%c0_17, %c0_18, %c0_19] : memref<1x128x128xf32, #tpu.memory_space<vmem>>, vector<1x128x128xf32>
      %26 = vector.shape_cast %25 : vector<1x128x128xf32> to vector<128x128xf32>
      %27 = vector.shape_cast %24 : vector<128x128xf32> to vector<1x128x128xf32>
      tpu.vector_store %arg7[%c0_17, %c0_18, %c0_19], %27 {strides = array<i32>} : memref<1x128x128xf32, #tpu.memory_space<vmem>>, vector<1x128x128xf32>,
    } else {
    }
    return
  }
  func.func @transform_0(%arg0: i32, %arg1: i32, %arg2: i32) -> (i32, i32, i32) {
    %c0_i32 = arith.constant 0 : i32
    %c0_i32_0 = arith.constant 0 : i32
    %c0_i32_1 = arith.constant 0 : i32
    return %arg0, %c0_i32, %c0_i32_0 : i32, i32, i32
  }
  func.func @transform_1(%arg0: i32, %arg1: i32, %arg2: i32) -> (i32, i32, i32) {
    %c0_i32 = arith.constant 0 : i32
    return %arg0, %arg1, %arg2 : i32, i32, i32
  }
  func.func @transform_2(%arg0: i32, %arg1: i32, %arg2: i32) -> (i32, i32) {
    %c0_i32 = arith.constant 0 : i32
    %c0_i32_0 = arith.constant 0 : i32
    %c0_i32_1 = arith.constant 0 : i32
    return %c0_i32, %c0_i32_0 : i32, i32
  }
  func.func @transform_3(%arg0: i32, %arg1: i32, %arg2: i32) -> (i32, i32) {
    %c0_i32 = arith.constant 0 : i32
    %c0_i32_0 = arith.constant 0 : i32
    %c0_i32_1 = arith.constant 0 : i32
    return %c0_i32, %c0_i32_0 : i32, i32
  }
  func.func @transform_4(%arg0: i32, %arg1: i32, %arg2: i32) -> (i32, i32, i32) {
    %c0_i32 = arith.constant 0 : i32
    %c0_i32_0 = arith.constant 0 : i32
    return %arg0, %arg1, %c0_i32 : i32, i32, i32
  }
}

</mosaic_0001>

<bundles_post_ra>
// kernel: tpu_custom_call.1
= control target key start
LH: loop header
LB: loop body
LE: loop exit
PB: predicated region body
PF: predicated region fallthrough
CT: control target
= control target key end

     0   :  { %9 = vsyncpa [#allocation5], 0  ;;  %s1181_s0 = inlined_call_operand.vmem [shape: f32[2,128,8], index: 0, kind: input, shape index: {}]   ;;  %s1182_s1 = inlined_call_operand.vmem [shape: f32[2,128,128], index: 1, kind: input, shape index: {}]   ;;  %s1183_s2 = inlined_call_operand.vmem [shape: f32[8,128], index: 2, kind: input, shape index: {}]   ;;  %s1184_s3 = inlined_call_operand.vmem [shape: f32[1,128], index: 3, kind: input, shape index: {}]   ;;  %s1185_s4 = inlined_call_operand.hbm [shape: f32[2,128,128], index: 4, kind: output, shape index: {}]  }
   0x1   :  { %11 = vsyncpa [#allocation5 + $0x1], 0  ;;  %s988_s15 = smov 0   ;;  %s990_s16 = smov 0  }
   0x2   :  { %s992_s17 = smov 0   ;;  %s994_s18 = smov 0  }
   0x3   :  { %s996_s19 = smov 0   ;;  %s998_s20 = smov 0  }
   0x4 LB: > { %s756_s21 = sadd.s32 4294967295, %s959_s20   ;;  %s757_s22 = sadd.s32 4294967294, %s959_s20   ;;  %s959_s20 = sphi %s998_s20, %s17_s20   ;;  %s955_s19 = sphi %s996_s19, %s1192_s19   ;;  %s951_s18 = sphi %s994_s18, %s1191_s18   ;;  %s947_s17 = sphi %s992_s17, %s1190_s17   ;;  %s943_s16 = sphi %s990_s16, %s1189_s16   ;;  %s939_s15 = sphi %s988_s15, %s1188_s15  }
   0x5   : > { %s36_s23 = sadd.s32 1, %s955_s19  ;;  %s143_s24 = sadd.s32 1, %s947_s17 }
   0x6   : > { %p38_p0 = scmp.ge.s32.totalorder %s36_s23, 2  ;;  %p153_p1 = scmp.ne.s32.totalorder %s947_s17, %s943_s16 }
   0x7   : > { %p154_p2 = scmp.eq.s32.totalorder %s756_s21, 1  ;;  %p159_p3 = scmp.ne.s32.totalorder %s943_s16, %s939_s15 }
   0x8   : > { %s1194_s23 = smov (%p38_p0, %s36_s23), 0  ;;  %p160_p5 = scmp.eq.s32.totalorder %s757_s22, 1 }
   0x9   : > { %p1028_p4 = por %p154_p2, %p153_p1  ;;  %s138_s26 = ssub.s32 %s955_s19, %s1194_s23 }
   0xa   : > { %p760_p6 = scmp.ge.s32.totalorder %s959_s20, 1  ;;  %p141_p7 = scmp.eq.s32.totalorder %s138_s26, 0 }
   0xb   : > { %p1035_p8 = por %p160_p5, %p159_p3  ;;  %p208_p9 = scmp.lt.s32.totalorder %s959_s20, 3 }
   0xc   : > { %s1041_s28 = scalar_select %p141_p7, %s947_s17, %s143_s24  }
   0xd   : > { %p209_p10 = pnand %p760_p6, %p208_p9 }
   0xe   : > { %p246_p11 = scmp.lt.s32.totalorder (!%p209_p10), %s951_s18, 1  ;;  %s243_s13 = sand.u32 (!%p209_p10), 1, %s943_s16  }
   0xf   : > { %212 = sbr.rel (%p209_p10) target bundleno = 428 (0x1ac), region = 36  ;;  %s761_s14 = sshll.u32 (!%p209_p10), %s243_s13, 7 }
  0x10   : > { %s1124_s24 = scalar_lea.vmem (!%p209_p10), [#allocation4], %s761_s14  ;;  %s789_s26 = sshll.u32 (!%p209_p10), %s951_s18, 7 }
  0x11   : > { %s640_s8 = scalar_lea.sflag (!%p209_p10), [#allocation5], %s243_s13 }
  0x14   : > { %v287_v0 = vld [vmem:[%s1183_s2] sm:$0xff]  ;;  %s1048_s5 = scalar_select %p246_p11, %s951_s18, 1  ;;  %vm288_vm0 = vcmask 64512  }
  0x15   : > { %352 = vmatpush.msra.mxu0 %v287_v0  ;;  %790 = vmatpush.msra.mxu3 %v287_v0  ;;  %v880_v49 = vld [vmem:[%s1184_s3] ss:$0 sm:$0xff] }
  0x16   : > { %s787_s6 = sshll.u32 %s1048_s5, 7  ;;  %s653_s5 = scalar_lea.hbm %s1185_s4, %s789_s26 }
  0x17   : > { %s1056_s9 = scalar_lea.vmem %s1181_s0, %s787_s6  ;;  %s1097_s12 = scalar_lea.vmem %s1182_s1, %s787_s6 }
  0x18   : > { %v271_v1 = vld [vmem:[%s1056_s9] sm:$0xff]  ;;  %v281_v2 = vld [vmem:[%s1056_s9 + $0x50] sm:$0xff]  ;;  %v272_v3 = vld [vmem:[%s1056_s9 + $0x8] sm:$0xff]  ;;  %s654_s6 = sshll.u32 %s1124_s24, 4  ;;  %s656_s7 = sshll.u32 %s653_s5, 4  ;;  %s655_s6 = int_to_ptr.vmem [resolvable:$true] %s654_s6  ;;  %s657_s7 = int_to_ptr.hbm [resolvable:$true] %s656_s7 }
  0x19   : > { %766 = vmatmul.msk.f32.vlgmr.msra.gmra.mxu0 %vm288_vm0, %v271_v1  ;;  %776 = vmatmul.msk.f32.vlgmr.msra.gmra.mxu3 %vm288_vm0, %v281_v2  ;;  %v282_v4 = vld [vmem:[%s1056_s9 + $0x58] sm:$0xff]  ;;  %v273_v5 = vld [vmem:[%s1056_s9 + $0x10] sm:$0xff]  ;;  %v283_v6 = vld [vmem:[%s1056_s9 + $0x60] sm:$0xff] }
  0x1a   : > { %v274_v7 = vld [vmem:[%s1056_s9 + $0x18] sm:$0xff]  ;;  %v284_v8 = vld [vmem:[%s1056_s9 + $0x68] sm:$0xff]  ;;  %v275_v9 = vld [vmem:[%s1056_s9 + $0x20] sm:$0xff] }
  0x1b   : > { %v285_v10 = vld [vmem:[%s1056_s9 + $0x70] sm:$0xff]  ;;  %v276_v11 = vld [vmem:[%s1056_s9 + $0x28] sm:$0xff]  ;;  %v286_v12 = vld [vmem:[%s1056_s9 + $0x78] sm:$0xff] }
  0x1c   : > { %v277_v13 = vld [vmem:[%s1056_s9 + $0x30] sm:$0xff]  ;;  %v278_v14 = vld [vmem:[%s1056_s9 + $0x38] sm:$0xff]  ;;  %v279_v15 = vld [vmem:[%s1056_s9 + $0x40] sm:$0xff] }
  0x1d   : > { %v280_v16 = vld [vmem:[%s1056_s9 + $0x48] sm:$0xff]  ;;  %v477_v33 = vld [vmem:[%s1097_s12 + $0x30] sm:$0xff]  ;;  %v471_v34 = vld [vmem:[%s1097_s12] sm:$0xff]  ;;  %s895_s9 = sshra.s32 %s657_s7, 4  ;;  %s896_s9 = int_to_ptr.hbm [resolvable:$true] %s895_s9 }
  0x1e   : > { %v484_v35 = vld [vmem:[%s1097_s12 + $0x68] sm:$0xff]  ;;  %v478_v36 = vld [vmem:[%s1097_s12 + $0x38] sm:$0xff]  ;;  %v485_v38 = vld [vmem:[%s1097_s12 + $0x70] sm:$0xff]  ;;  %s897_s18 = scalar_lea.hbm %s896_s9, 128  ;;  %p902_p1 = scmp.lt.s32.totalorder %s896_s9, %s1185_s4 }
  0x1f   : > { %v472_v37 = vld [vmem:[%s1097_s12 + $0x8] sm:$0xff]  ;;  %v479_v39 = vld [vmem:[%s1097_s12 + $0x40] sm:$0xff]  ;;  %v473_v40 = vld [vmem:[%s1097_s12 + $0x10] sm:$0xff]  ;;  %p898_p12 = scmp.ne.s32.totalorder %s896_s9, %s897_s18 }
  0x20   : > { %v486_v41 = vld [vmem:[%s1097_s12 + $0x78] sm:$0xff]  ;;  %v480_v42 = vld [vmem:[%s1097_s12 + $0x48] sm:$0xff]  ;;  %v481_v44 = vld [vmem:[%s1097_s12 + $0x50] sm:$0xff] }
  0x21   : > { %767 = vmatmul.msk.f32.gmra.mxu0 %vm288_vm0, %v272_v3  ;;  %777 = vmatmul.msk.f32.gmra.mxu3 %vm288_vm0, %v282_v4  ;;  %v474_v43 = vld [vmem:[%s1097_s12 + $0x18] sm:$0xff]  ;;  %v475_v45 = vld [vmem:[%s1097_s12 + $0x20] sm:$0xff]  ;;  %v476_v47 = vld [vmem:[%s1097_s12 + $0x28] sm:$0xff]  ;;  %p899_p13 = pnand %p898_p12, %p1028_p4 }
  0x22   : > { %v482_v46 = vld [vmem:[%s1097_s12 + $0x58] sm:$0xff]  ;;  %v483_v48 = vld [vmem:[%s1097_s12 + $0x60] sm:$0xff]  ;;  %s901_s12 = scalar_lea.hbm %s1185_s4, 256 }
  0x23   : > { %p900_p0 = pneg %p899_p13  ;;  %p903_p2 = scmp.lt.s32.totalorder %s901_s12, %s897_s18 }
  0x25   : > { %p904_p3 = por %p903_p2, %p902_p1 }
  0x27   : > { %p905_p5 = pnand %p904_p3, %p900_p0 }
  0x29   : > { %768 = vmatmul.msk.f32.gmra.mxu0 %vm288_vm0, %v273_v5  ;;  %778 = vmatmul.msk.f32.gmra.mxu3 %vm288_vm0, %v283_v6 }
  0x31   : > { %769 = vmatmul.msk.f32.gmra.mxu0 %vm288_vm0, %v274_v7  ;;  %779 = vmatmul.msk.f32.gmra.mxu3 %vm288_vm0, %v284_v8 }
  0x39   : > { %770 = vmatmul.msk.f32.gmra.mxu0 %vm288_vm0, %v275_v9  ;;  %780 = vmatmul.msk.f32.gmra.mxu3 %vm288_vm0, %v285_v10 }
  0x41   : > { %771 = vmatmul.msk.f32.gmra.mxu0 %vm288_vm0, %v276_v11  ;;  %781 = vmatmul.msk.f32.gmra.mxu3 %vm288_vm0, %v286_v12 }
  0x49   : > { %772 = vmatmul.msk.f32.gmra.mxu0 %vm288_vm0, %v277_v13 }
  0x51   : > { %773 = vmatmul.msk.f32.gmra.mxu0 %vm288_vm0, %v278_v14 }
  0x59   : > { %774 = vmatmul.msk.f32.gmra.mxu0 %vm288_vm0, %v279_v15 }
  0x61   : > { %775 = vmatmul.msk.f32.gmra.mxu0 %vm288_vm0, %v280_v16 }
  0x96   : > { %v1090_v17 = vpop.f32.mrf.mxu0 }
  0x9c   : > { %v384_v18 = vpop.f32.mrf.mxu3 }
  0x9e   : > { %v357_v19 = vpop.f32.mrf.mxu0 }
  0xa4   : > { %v387_v20 = vpop.f32.mrf.mxu3 }
  0xa6   : > { %v360_v21 = vpop.f32.mrf.mxu0 }
  0xac   : > { %v390_v22 = vpop.f32.mrf.mxu3 }
  0xae   : > { %v363_v23 = vpop.f32.mrf.mxu0 }
  0xb4   : > { %v393_v24 = vpop.f32.mrf.mxu3 }
  0xb6   : > { %v366_v25 = vpop.f32.mrf.mxu0 }
  0xbc   : > { %v396_v26 = vpop.f32.mrf.mxu3 }
  0xbe   : > { %v369_v27 = vpop.f32.mrf.mxu0 }
  0xc4   : > { %v399_v28 = vpop.f32.mrf.mxu3 }
  0xc5   : > { %487 = vmatpush.msra.mxu1 %v399_v28  ;;  %791 = vmatpush.msra.mxu2 %v399_v28 }
  0xc6   : > { %792 = vmatpush.msrb.mxu3 %v399_v28  ;;  %v372_v29 = vpop.f32.mrf.mxu0 }
  0xc7   : > { %488 = vmatpush.msra.mxu1 %v396_v26  ;;  %793 = vmatpush.msra.mxu2 %v396_v26 }
  0xc8   : > { %794 = vmatpush.msrb.mxu3 %v396_v26 }
  0xc9   : > { %489 = vmatpush.msra.mxu1 %v393_v24  ;;  %795 = vmatpush.msra.mxu2 %v393_v24 }
  0xca   : > { %796 = vmatpush.msrb.mxu3 %v393_v24 }
  0xcb   : > { %490 = vmatpush.msra.mxu1 %v390_v22  ;;  %797 = vmatpush.msra.mxu2 %v390_v22 }
  0xcc   : > { %798 = vmatpush.msrb.mxu3 %v390_v22 }
  0xcd   : > { %491 = vmatpush.msra.mxu1 %v387_v20  ;;  %799 = vmatpush.msra.mxu2 %v387_v20 }
  0xce   : > { %800 = vmatpush.msrb.mxu3 %v387_v20  ;;  %v375_v30 = vpop.f32.mrf.mxu0 }
  0xcf   : > { %492 = vmatpush.msra.mxu1 %v384_v18  ;;  %801 = vmatpush.msra.mxu2 %v384_v18 }
  0xd0   : > { %802 = vmatpush.msrb.mxu3 %v384_v18 }
  0xd6   : > { %v378_v31 = vpop.f32.mrf.mxu0 }
  0xde   : > { %v381_v32 = vpop.f32.mrf.mxu0 }
  0xdf   : > { %493 = vmatpush.msra.mxu1 %v381_v32  ;;  %803 = vmatpush.msra.mxu2 %v381_v32 }
  0xe0   : > { %804 = vmatpush.msrb.mxu3 %v381_v32 }
  0xe1   : > { %494 = vmatpush.msra.mxu1 %v378_v31  ;;  %805 = vmatpush.msra.mxu2 %v378_v31 }
  0xe2   : > { %806 = vmatpush.msrb.mxu3 %v378_v31 }
  0xe3   : > { %495 = vmatpush.msra.mxu1 %v375_v30  ;;  %807 = vmatpush.msra.mxu2 %v375_v30 }
  0xe4   : > { %808 = vmatpush.msrb.mxu3 %v375_v30 }
  0xe5   : > { %496 = vmatpush.msra.mxu1 %v372_v29  ;;  %809 = vmatpush.msra.mxu2 %v372_v29 }
  0xe6   : > { %810 = vmatpush.msrb.mxu3 %v372_v29 }
  0xe7   : > { %497 = vmatpush.msra.mxu1 %v369_v27  ;;  %811 = vmatpush.msra.mxu2 %v369_v27 }
  0xe8   : > { %812 = vmatpush.msrb.mxu3 %v369_v27 }
  0xe9   : > { %498 = vmatpush.msra.mxu1 %v366_v25  ;;  %813 = vmatpush.msra.mxu2 %v366_v25 }
  0xea   : > { %814 = vmatpush.msrb.mxu3 %v366_v25 }
  0xeb   : > { %499 = vmatpush.msra.mxu1 %v363_v23  ;;  %815 = vmatpush.msra.mxu2 %v363_v23 }
  0xec   : > { %816 = vmatpush.msrb.mxu3 %v363_v23 }
  0xed   : > { %500 = vmatpush.msra.mxu1 %v360_v21  ;;  %817 = vmatpush.msra.mxu2 %v360_v21 }
  0xee   : > { %818 = vmatpush.msrb.mxu3 %v360_v21 }
  0xef   : > { %501 = vmatpush.msra.mxu1 %v357_v19  ;;  %819 = vmatpush.msra.mxu2 %v357_v19 }
  0xf0   : > { %820 = vmatpush.msrb.mxu3 %v357_v19 }
  0xf1   : > { %502 = vmatpush.msra.mxu1 %v1090_v17  ;;  %821 = vmatpush.msra.mxu2 %v1090_v17 }
  0xf2   : > { %822 = vmatpush.msrb.mxu3 %v1090_v17  ;;  %521 = vmatmul.f32.vlgmr.msra.gmra.mxu2 %v477_v33 }
  0xf3   : > { %503 = vmatmul.f32.vlgmr.msra.gmra.mxu1 %v471_v34  ;;  %542 = vmatmul.f32.vlgmr.msrb.gmra.mxu3 %v484_v35 }
  0xfa   : > { %524 = vmatmul.f32.gmra.mxu2 %v478_v36 }
  0xfb   : > { %506 = vmatmul.f32.gmra.mxu1 %v472_v37  ;;  %545 = vmatmul.f32.gmra.mxu3 %v485_v38 }
 0x102   : > { %527 = vmatmul.f32.gmra.mxu2 %v479_v39 }
 0x103   : > { %509 = vmatmul.f32.gmra.mxu1 %v473_v40  ;;  %548 = vmatmul.f32.gmra.mxu3 %v486_v41 }
 0x10a   : > { %530 = vmatmul.f32.gmra.mxu2 %v480_v42 }
 0x10b   : > { %512 = vmatmul.f32.gmra.mxu1 %v474_v43 }
 0x112   : > { %533 = vmatmul.f32.gmra.mxu2 %v481_v44 }
 0x113   : > { %515 = vmatmul.f32.gmra.mxu1 %v475_v45 }
 0x11a   : > { %536 = vmatmul.f32.gmra.mxu2 %v482_v46 }
 0x11b   : > { %518 = vmatmul.f32.gmra.mxu1 %v476_v47 }
 0x122   : > { %539 = vmatmul.f32.gmra.mxu2 %v483_v48 }
 0x170   : > { %v504_v50 = vpop.f32.mrf.mxu1 }
 0x171   : > { %v607_v51 = vadd.f32 %v880_v49, %v504_v50 }
 0x173   : > { %623 = vst [vmem:[%s1124_s24] sm:$0xff] %v607_v51 }
 0x175   : > { %v522_v52 = vpop.f32.mrf.mxu2 }
 0x176   : > { %v613_v53 = vadd.f32 %v880_v49, %v522_v52  ;;  %v543_v54 = vpop.f32.mrf.mxu3 }
 0x177   : > { %v620_v55 = vadd.f32 %v880_v49, %v543_v54 }
 0x178   : > { %629 = vst [vmem:[%s1124_s24 + $0x30] sm:$0xff] %v613_v53  ;;  %v507_v56 = vpop.f32.mrf.mxu1 }
 0x179   : > { %v608_v57 = vadd.f32 %v880_v49, %v507_v56  ;;  %636 = vst [vmem:[%s1124_s24 + $0x68] sm:$0xff] %v620_v55 }
 0x17b   : > { %624 = vst [vmem:[%s1124_s24 + $0x8] sm:$0xff] %v608_v57 }
 0x17d   : > { %v525_v58 = vpop.f32.mrf.mxu2 }
 0x17e   : > { %v614_v59 = vadd.f32 %v880_v49, %v525_v58  ;;  %v546_v60 = vpop.f32.mrf.mxu3 }
 0x17f   : > { %v621_v61 = vadd.f32 %v880_v49, %v546_v60 }
 0x180   : > { %630 = vst [vmem:[%s1124_s24 + $0x38] sm:$0xff] %v614_v59  ;;  %v510_v62 = vpop.f32.mrf.mxu1 }
 0x181   : > { %v609_v63 = vadd.f32 %v880_v49, %v510_v62  ;;  %637 = vst [vmem:[%s1124_s24 + $0x70] sm:$0xff] %v621_v61 }
 0x183   : > { %625 = vst [vmem:[%s1124_s24 + $0x10] sm:$0xff] %v609_v63 }
 0x185   : > { %v528_v0 = vpop.f32.mrf.mxu2 }
 0x186   : > { %v615_v1 = vadd.f32 %v880_v49, %v528_v0  ;;  %v549_v2 = vpop.f32.mrf.mxu3 }
 0x187   : > { %v622_v3 = vadd.f32 %v880_v49, %v549_v2 }
 0x188   : > { %631 = vst [vmem:[%s1124_s24 + $0x40] sm:$0xff] %v615_v1  ;;  %v513_v4 = vpop.f32.mrf.mxu1 }
 0x189   : > { %v610_v5 = vadd.f32 %v880_v49, %v513_v4  ;;  %638 = vst [vmem:[%s1124_s24 + $0x78] sm:$0xff] %v622_v3 }
 0x18b   : > { %626 = vst [vmem:[%s1124_s24 + $0x18] sm:$0xff] %v610_v5 }
 0x18d   : > { %v531_v6 = vpop.f32.mrf.mxu2 }
 0x18e   : > { %v616_v7 = vadd.f32 %v880_v49, %v531_v6 }
 0x190   : > { %632 = vst [vmem:[%s1124_s24 + $0x48] sm:$0xff] %v616_v7  ;;  %v516_v8 = vpop.f32.mrf.mxu1 }
 0x191   : > { %v611_v9 = vadd.f32 %v880_v49, %v516_v8 }
 0x193   : > { %627 = vst [vmem:[%s1124_s24 + $0x20] sm:$0xff] %v611_v9 }
 0x195   : > { %v534_v10 = vpop.f32.mrf.mxu2 }
 0x196   : > { %v617_v11 = vadd.f32 %v880_v49, %v534_v10 }
 0x198   : > { %633 = vst [vmem:[%s1124_s24 + $0x50] sm:$0xff] %v617_v11  ;;  %v519_v12 = vpop.f32.mrf.mxu1 }
 0x199   : > { %v612_v13 = vadd.f32 %v880_v49, %v519_v12 }
 0x19b   : > { %628 = vst [vmem:[%s1124_s24 + $0x28] sm:$0xff] %v612_v13 }
 0x19d   : > { %v537_v14 = vpop.f32.mrf.mxu2 }
 0x19e   : > { %v618_v15 = vadd.f32 %v880_v49, %v537_v14 }
 0x1a0   : > { %634 = vst [vmem:[%s1124_s24 + $0x58] sm:$0xff] %v618_v15 }
 0x1a5   : > { %v540_v16 = vpop.f32.mrf.mxu2 }
 0x1a6   : > { %v619_v17 = vadd.f32 %v880_v49, %v540_v16 }
 0x1a8   : > { %635 = vst [vmem:[%s1124_s24 + $0x60] sm:$0xff] %v619_v17 }
 0x1a9   : > { %908 = shalt.err (!%p905_p5)
}
 0x1aa   : > { %s961_s13 = smov 128   ;;  %s962_s22 = smov 8  }
 0x1ab   : > { %823 = dma.vmem_to_hbm [thread:$0]  (%p1028_p4), %s655_s6, 2048, %s657_s7, %s640_s8, %s961_s13, %s961_s13, %s962_s22  }
 0x1ac PF: > { %p829_p6 = scmp.ge.s32.totalorder %s959_s20, 2  ;;  %s671_s24 = sand.u32 1, %s939_s15  }
 0x1ad   : > { %s672_s26 = scalar_lea.sflag [#allocation5], %s671_s24 }
 0x1ae   : > { %p826_p7 = pnand %p829_p6, %p1035_p8 }
 0x1b0   : > { %p827_p9 = pneg %p826_p7 }
 0x1b2   : > { %934 = dma.done.wait (%p827_p9), %s672_s26, 2048  }
 0x1b3   : > { %936 = vsyncadd (%p827_p9), %s672_s26, 4294965248  ;;  %s17_s20 = sadd.s32 1, %s959_s20   ;;  %s1188_s15 = smov %s943_s16 }
 0x1b4   : > { %p14_p10 = scmp.ge.s32.totalorder %s17_s20, 4   ;;  %s1189_s16 = smov %s947_s17 }
 0x1b5   : > { %s1190_s17 = smov %s1041_s28  ;;  %s1191_s18 = smov %s955_s19 }
 0x1b6   : > { %s1192_s19 = smov %s1194_s23  ;;  %16 = sbr.rel (!%p14_p10) target bundleno = 4 (0x4), region = 87 }
 0x1bb   :  { %678 = vsyncpa [#allocation5], 1 }
 0x1bc   :  { %680 = vsyncpa [#allocation5 + $0x1], 1 }

</bundles_post_ra>
